<compile_context>
chip_gen: v7x
topology: tpu7x:2x2x1
jax: 0.10.0
libtpu: 0.0.40
codegen_flags: <defaults>
</compile_context>

<pallas_src>
import functools

import jax
import jax.numpy as jnp
import numpy as np
from jax.experimental import pallas as pl
from jax.experimental.pallas import tpu as pltpu

_MIB = 1024 * 1024
_F32_TEMPS = 6  # peak live (tb, D) f32 temporaries inside the kernel (q_comb, e0, s, exp, prod, slack)


def _vmem_capacity_bytes():
    """Physical VMEM per core; conservative 64 MiB (v7x) if unknown."""
    try:
        if hasattr(pltpu, "get_tpu_info"):
            cap = int(getattr(pltpu.get_tpu_info(), "vmem_capacity_bytes", 0))
            if cap > 0:
                return cap
    except Exception:
        pass
    return 64 * _MIB


_VMEM_CAPACITY = _vmem_capacity_bytes()
# v5e/v6e (128 MiB) -> 100 MiB scoped limit; v7x (64 MiB) -> 56 MiB.
_VMEM_LIMIT_BYTES = min(_VMEM_CAPACITY - 8 * _MIB, 100 * _MIB)
_TILE_BUDGET_BYTES = _VMEM_LIMIT_BYTES - 4 * _MIB


def _recip(x):
    """Reciprocal of the (rows, 1) softmax denominators (exact)."""
    if hasattr(pl, "reciprocal"):
        return pl.reciprocal(x, approx=False)  # approx=True breaks 1e-5 tol
    return 1.0 / x


def _dino_loss_kernel(inv_tt_ref,                            # SMEM: (1,) = 1/teacher_temp
                      student_ref, teacher_ref, center_ref,  # VMEM input tiles
                      loss_ref, csum_ref,                     # VMEM outputs (per-split partials)
                      *, ncrops, inv_student_temp):
    j = pl.program_id(1)  # inner (accumulation) axis

    @pl.when(j == 0)
    def _init():
        loss_ref[...] = jnp.zeros_like(loss_ref)
        csum_ref[...] = jnp.zeros_like(csum_ref)

    inv_tt = inv_tt_ref[0]                               # epoch teacher temp (recip)
    center = center_ref[...].astype(jnp.float32)         # (1, D), resident across grid

    # ---- teacher phase: softmax numerators + per-row reciprocals.
    #      No normalized q per crop, no logp arrays are ever materialized.
    t0 = teacher_ref[0].astype(jnp.float32)              # (tb, D)
    t1 = teacher_ref[1].astype(jnp.float32)
    # Teacher column-sum for the EMA center update (raw, pre-softmax).
    csum_ref[...] += jnp.sum(t0 + t1, axis=0, keepdims=True)            # (1, D)

    def _softmax_exp(t_raw):
        t = (t_raw - center) * inv_tt
        t = t - jnp.max(t, axis=-1, keepdims=True)
        e = jnp.exp(t)                                                   # (tb, D)
        inv = _recip(jnp.sum(e, axis=-1, keepdims=True))                 # (tb, 1)
        return e, inv

    e0, inv0 = _softmax_exp(t0)
    e1, inv1 = _softmax_exp(t1)
    q_comb = e0 * inv0 + e1 * inv1       # (tb, D), rows sum to 2; e1 is now dead.
    # Persistent (tb, D) f32 arrays across the student loop: q_comb, e0 only.

    # ---- student phase: each crop's CE collapses to per-row scalars.
    #      For a pair (iq, v):  q_iq . logp_v = q_iq . s_shift_v - lse_v
    rows = None
    for v in range(ncrops):
        s = student_ref[v].astype(jnp.float32) * inv_student_temp        # (tb, D)
        s = s - jnp.max(s, axis=-1, keepdims=True)
        lse = jnp.log(jnp.sum(jnp.exp(s), axis=-1, keepdims=True))       # (tb, 1)
        if v == 0:
            # only pair (iq=1, v=0):  q1.s = q_comb.s - q0.s
            cross = jnp.sum(q_comb * s, axis=-1, keepdims=True)
            c0 = jnp.sum(e0 * s, axis=-1, keepdims=True) * inv0
            contrib = (cross - c0) - lse
        elif v == 1:
            # only pair (iq=0, v=1)
            c0 = jnp.sum(e0 * s, axis=-1, keepdims=True) * inv0
            contrib = c0 - lse
        else:
            # pairs (0, v) and (1, v)
            cross = jnp.sum(q_comb * s, axis=-1, keepdims=True)
            contrib = cross - 2.0 * lse
        rows = contrib if rows is None else rows + contrib               # (tb, 1)

    # One scalar partial per tile, accumulated into the per-split output block.
    loss_ref[...] += -jnp.sum(rows, axis=0, keepdims=True)               # (1, 1)


def _pick_batch_tile(B, D, ncrops, itemsize, budget_bytes, override=None):
    """Largest legal batch tile fitting the VMEM budget.

    Accounts for double-buffered inputs plus the live f32 temporaries the
    kernel keeps; the tile is only ever rounded DOWN (never past the budget)
    and must be a sublane-aligned divisor of B (or B itself)."""
    sub = 16 if itemsize == 2 else 8
    if override is not None:
        tb = int(override)
    else:
        per_row = 2 * (ncrops + 2) * D * itemsize + _F32_TEMPS * D * 4
        fixed = 4 * D * 4 + 2 * (D + 128) * 4      # resident center + output blocks
        tb = max(1, (budget_bytes - fixed) // per_row)
    if tb >= B:
        return B
    tb = (tb // sub) * sub                          # round DOWN to sublane multiple
    if tb < sub:
        return B                                    # too small to tile legally; use full batch
    t = min(tb, B)
    while t >= sub:
        if B % t == 0:
            return t
        t -= sub
    return B


def _build_pallas_call(ncrops, B, D, tb, n_split, student_temp):
    nb = B // tb
    assert nb % n_split == 0
    nb_inner = nb // n_split
    kernel = functools.partial(
        _dino_loss_kernel, ncrops=ncrops, inv_student_temp=1.0 / student_temp)
    grid_spec = pltpu.PrefetchScalarGridSpec(
        num_scalar_prefetch=1,                      # 1/teacher_temp in SMEM
        grid=(n_split, nb_inner),
        in_specs=[
            pl.BlockSpec((ncrops, tb, D), lambda c, i, tt: (0, c * nb_inner + i, 0)),
            pl.BlockSpec((2, tb, D), lambda c, i, tt: (0, c * nb_inner + i, 0)),
            pl.BlockSpec((1, D), lambda c, i, tt: (0, 0)),
        ],
        out_specs=(
            pl.BlockSpec((None, 1, 1), lambda c, i, tt: (c, 0, 0)),
            pl.BlockSpec((None, 1, D), lambda c, i, tt: (c, 0, 0)),
        ),
    )
    return pl.pallas_call(
        kernel,
        out_shape=(jax.ShapeDtypeStruct((n_split, 1, 1), jnp.float32),
                   jax.ShapeDtypeStruct((n_split, 1, D), jnp.float32)),
        grid_spec=grid_spec,
        compiler_params=pltpu.CompilerParams(
            dimension_semantics=("parallel", "arbitrary"),   # outer axis -> 2 TCs on v7x
            vmem_limit_bytes=int(_VMEM_LIMIT_BYTES)),
    )


@functools.partial(jax.jit,
                   static_argnames=("ncrops", "tb", "n_split", "student_temp",
                                    "center_momentum"))
def _dino_forward(inv_teacher_temp, student3, teacher3, center, *,
                  ncrops, tb, n_split, student_temp, center_momentum):
    _, B, D = teacher3.shape
    call = _build_pallas_call(ncrops, B, D, tb, n_split, student_temp)
    loss_parts, csum_parts = call(inv_teacher_temp, student3, teacher3, center)
    n_loss_terms = 2 * (ncrops - 1)
    loss = jnp.sum(loss_parts) / (B * n_loss_terms)
    batch_center = jnp.sum(csum_parts, axis=0) / (2.0 * B)               # (1, D)
    new_center = center * center_momentum + batch_center * (1.0 - center_momentum)
    return loss, new_center


class DINOLossPallas:
    """JAX/Pallas port of DINOLoss. forward() returns (loss, new_center)."""

    def __init__(self, out_dim, ncrops, warmup_teacher_temp, teacher_temp,
                 warmup_teacher_temp_epochs, nepochs,
                 student_temp=0.1, center_momentum=0.9,
                 block_batch=None, hbm_dtype=None):
        assert ncrops >= 2
        self.out_dim = out_dim
        self.ncrops = ncrops
        self.student_temp = float(student_temp)
        self.center_momentum = float(center_momentum)
        self.block_batch = block_batch
        self.hbm_dtype = hbm_dtype        # e.g. jnp.bfloat16 to halve HBM traffic
        # register_buffer('center', zeros(1, out_dim)) -- deterministic init.
        self.center = jnp.zeros((1, out_dim), jnp.float32)
        self.teacher_temp_schedule = np.concatenate((
            np.linspace(warmup_teacher_temp, teacher_temp,
                        warmup_teacher_temp_epochs),
            np.ones(nepochs - warmup_teacher_temp_epochs) * teacher_temp,
        ))

    def forward(self, student_output, teacher_output, epoch):
        D = student_output.shape[-1]
        assert D == self.out_dim
        assert teacher_output.shape[0] % 2 == 0
        B = teacher_output.shape[0] // 2
        assert student_output.shape[0] == self.ncrops * B

        if self.hbm_dtype is not None:
            student_output = student_output.astype(self.hbm_dtype)
            teacher_output = teacher_output.astype(self.hbm_dtype)

        # Free reshapes: crop-major chunking identical to torch .chunk().
        student3 = student_output.reshape(self.ncrops, B, D)
        teacher3 = teacher_output.reshape(2, B, D)

        tb = _pick_batch_tile(B, D, self.ncrops,
                              student3.dtype.itemsize,
                              _TILE_BUDGET_BYTES,
                              override=self.block_batch)
        nb = B // tb
        n_split = 2 if (nb >= 2 and nb % 2 == 0) else 1

        # Epoch-dependent temperature as a runtime SMEM scalar -> no recompile.
        inv_tt = jnp.asarray([1.0 / float(self.teacher_temp_schedule[epoch])],
                             jnp.float32)
        loss, new_center = _dino_forward(
            inv_tt, student3, teacher3, self.center,
            ncrops=self.ncrops, tb=tb, n_split=n_split,
            student_temp=self.student_temp,
            center_momentum=self.center_momentum)
        self.center = new_center
        return loss, new_center


def _reference(student_output, teacher_output, center, ncrops,
               student_temp, teacher_temp, center_momentum):
    """Pure-JAX reference reproducing the PyTorch forward (world_size=1)."""
    B = teacher_output.shape[0] // 2
    s = student_output / student_temp
    q = jax.nn.softmax((teacher_output - center) / teacher_temp, axis=-1)
    logp = jax.nn.log_softmax(s, axis=-1)
    total = 0.0
    n = 0
    for iq in range(2):
        for v in range(ncrops):
            if v == iq:
                continue
            loss = jnp.sum(-q[iq * B:(iq + 1) * B] * logp[v * B:(v + 1) * B],
                           axis=-1)
            total = total + jnp.mean(loss)
            n += 1
    total = total / n
    new_center = (center * center_momentum
                  + (jnp.sum(teacher_output, axis=0, keepdims=True) / (2 * B))
                  * (1.0 - center_momentum))
    return total, new_center


if __name__ == "__main__":
    out_dim = 256
    ncrops = 4
    batch = 32

    key = jax.random.PRNGKey(0)
    k1, k2 = jax.random.split(key)
    student_output = jax.random.normal(k1, (ncrops * batch, out_dim), jnp.float32)
    teacher_output = jax.random.normal(k2, (2 * batch, out_dim), jnp.float32)

    # ---- f32 path: 4 batch tiles -> 2 core-splits x 2 accumulation steps.
    loss_mod = DINOLossPallas(
        out_dim=out_dim, ncrops=ncrops,
        warmup_teacher_temp=0.04, teacher_temp=0.07,
        warmup_teacher_temp_epochs=3, nepochs=10,
        student_temp=0.1, center_momentum=0.9,
        block_batch=8)

    # Two epochs with different teacher temps reuse the same compiled kernel.
    for epoch in (1, 5):
        center_before = loss_mod.center
        loss, new_center = loss_mod.forward(student_output, teacher_output, epoch)
        jax.block_until_ready(loss)
        jax.block_until_ready(new_center)

        ttemp = float(loss_mod.teacher_temp_schedule[epoch])
        ref_loss, ref_center = _reference(student_output, teacher_output,
                                          center_before, ncrops,
                                          loss_mod.student_temp, ttemp,
                                          loss_mod.center_momentum)
        np.testing.assert_allclose(np.asarray(loss), np.asarray(ref_loss),
                                   rtol=1e-5, atol=1e-5)
        np.testing.assert_allclose(np.asarray(new_center),
                                   np.asarray(ref_center),
                                   rtol=1e-5, atol=1e-6)

    # ---- bf16-over-HBM path (kernel math stays f32); reference is fed the
    #      same bf16-rounded values so only reduction order differs.
    loss_bf16 = DINOLossPallas(
        out_dim=out_dim, ncrops=ncrops,
        warmup_teacher_temp=0.04, teacher_temp=0.07,
        warmup_teacher_temp_epochs=3, nepochs=10,
        student_temp=0.1, center_momentum=0.9,
        block_batch=16, hbm_dtype=jnp.bfloat16)
    s_bf = student_output.astype(jnp.bfloat16).astype(jnp.float32)
    t_bf = teacher_output.astype(jnp.bfloat16).astype(jnp.float32)
    center_before = loss_bf16.center
    loss, new_center = loss_bf16.forward(student_output, teacher_output, epoch=2)
    jax.block_until_ready(loss)
    jax.block_until_ready(new_center)
    ttemp = float(loss_bf16.teacher_temp_schedule[2])
    ref_loss, ref_center = _reference(s_bf, t_bf, center_before, ncrops,
                                      loss_bf16.student_temp, ttemp,
                                      loss_bf16.center_momentum)
    np.testing.assert_allclose(np.asarray(loss), np.asarray(ref_loss),
                               rtol=1e-4, atol=1e-4)
    np.testing.assert_allclose(np.asarray(new_center), np.asarray(ref_center),
                               rtol=1e-4, atol=1e-4)

    print("KERNEL_OK")
</pallas_src>

<mosaic_0001>
module attributes {stable_mosaic.version = 11 : i64} {
  func.func @_dino_loss_kernel(%arg0: i32, %arg1: i32, %arg2: memref<1xf32, #tpu.memory_space<smem>>, %arg3: memref<4x8x256xf32, #tpu.memory_space<vmem>>, %arg4: memref<2x8x256xf32, #tpu.memory_space<vmem>>, %arg5: memref<1x256xf32, #tpu.memory_space<vmem>>, %arg6: memref<1x1x1xf32, #tpu.memory_space<vmem>>, %arg7: memref<1x1x256xf32, #tpu.memory_space<vmem>>) attributes {dimension_semantics = [#tpu.dimension_semantics<parallel>, #tpu.dimension_semantics<arbitrary>], iteration_bounds = array<i64: 2, 2>, scalar_prefetch = 1 : i64, scratch_operands = 0 : i64, tpu.core_type = #tpu.core_type<tc>, window_params = [{transform_indices = @transform_0, window_bounds = array<i64: 4, 8, 256>}, {transform_indices = @transform_1, window_bounds = array<i64: 2, 8, 256>}, {pipeline_mode = #tpu.pipeline_mode<synchronous>, transform_indices = @transform_2, window_bounds = array<i64: 1, 256>}, {transform_indices = @transform_3, window_bounds = array<i64: 1, 1, 1>}, {transform_indices = @transform_4, window_bounds = array<i64: 1, 1, 256>}]} {
    %c0_i32 = arith.constant 0 : i32
    %0 = arith.cmpi eq, %arg1, %c0_i32 : i32
    %1 = arith.extui %0 : i1 to i32
    %c0_i32_0 = arith.constant 0 : i32
    %2 = arith.cmpi ne, %1, %c0_i32_0 : i32
    scf.if %2 {
      %cst_55 = arith.constant 0.000000e+00 : f32
      %134 = vector.broadcast %cst_55 : f32 to vector<1x1xf32>
      %c0_56 = arith.constant 0 : index
      %c0_57 = arith.constant 0 : index
      %c0_58 = arith.constant 0 : index
      %135 = vector.load %arg6[%c0_56, %c0_57, %c0_58] : memref<1x1x1xf32, #tpu.memory_space<vmem>>, vector<1x1x1xf32>
      %136 = vector.shape_cast %135 : vector<1x1x1xf32> to vector<1x1xf32>
      %137 = vector.shape_cast %134 : vector<1x1xf32> to vector<1x1x1xf32>
      tpu.vector_store %arg6[%c0_56, %c0_57, %c0_58], %137 {strides = array<i32>} : memref<1x1x1xf32, #tpu.memory_space<vmem>>, vector<1x1x1xf32>,
      %cst_59 = arith.constant 0.000000e+00 : f32
      %138 = vector.broadcast %cst_59 : f32 to vector<1x256xf32>
      %c0_60 = arith.constant 0 : index
      %c0_61 = arith.constant 0 : index
      %c0_62 = arith.constant 0 : index
      %139 = vector.load %arg7[%c0_60, %c0_61, %c0_62] : memref<1x1x256xf32, #tpu.memory_space<vmem>>, vector<1x1x256xf32>
      %140 = vector.shape_cast %139 : vector<1x1x256xf32> to vector<1x256xf32>
      %141 = vector.shape_cast %138 : vector<1x256xf32> to vector<1x1x256xf32>
      tpu.vector_store %arg7[%c0_60, %c0_61, %c0_62], %141 {strides = array<i32>} : memref<1x1x256xf32, #tpu.memory_space<vmem>>, vector<1x1x256xf32>,
    } else {
    }
    %c0 = arith.constant 0 : index
    %3 = memref.load %arg2[%c0] : memref<1xf32, #tpu.memory_space<smem>>
    %c0_1 = arith.constant 0 : index
    %c0_2 = arith.constant 0 : index
    %4 = vector.load %arg5[%c0_1, %c0_2] : memref<1x256xf32, #tpu.memory_space<vmem>>, vector<1x256xf32>
    %c0_3 = arith.constant 0 : index
    %c0_4 = arith.constant 0 : index
    %c0_5 = arith.constant 0 : index
    %5 = vector.load %arg4[%c0_3, %c0_4, %c0_5] : memref<2x8x256xf32, #tpu.memory_space<vmem>>, vector<1x8x256xf32>
    %6 = vector.shape_cast %5 : vector<1x8x256xf32> to vector<8x256xf32>
    %c1 = arith.constant 1 : index
    %c0_6 = arith.constant 0 : index
    %c0_7 = arith.constant 0 : index
    %7 = vector.load %arg4[%c1, %c0_6, %c0_7] : memref<2x8x256xf32, #tpu.memory_space<vmem>>, vector<1x8x256xf32>
    %8 = vector.shape_cast %7 : vector<1x8x256xf32> to vector<8x256xf32>
    %c0_8 = arith.constant 0 : index
    %c0_9 = arith.constant 0 : index
    %c0_10 = arith.constant 0 : index
    %9 = vector.load %arg7[%c0_8, %c0_9, %c0_10] : memref<1x1x256xf32, #tpu.memory_space<vmem>>, vector<1x1x256xf32>
    %10 = vector.shape_cast %9 : vector<1x1x256xf32> to vector<1x256xf32>
    %11 = arith.addf %6, %8 : vector<8x256xf32>
    %cst = arith.constant dense<0.000000e+00> : vector<256xf32>
    %12 = vector.multi_reduction <add>, %11, %cst [0] : vector<8x256xf32> to vector<256xf32>
    %13 = vector.shape_cast %12 : vector<256xf32> to vector<1x256xf32>
    %14 = arith.addf %10, %13 : vector<1x256xf32>
    %c0_11 = arith.constant 0 : index
    %c0_12 = arith.constant 0 : index
    %c0_13 = arith.constant 0 : index
    %15 = vector.load %arg7[%c0_11, %c0_12, %c0_13] : memref<1x1x256xf32, #tpu.memory_space<vmem>>, vector<1x1x256xf32>
    %16 = vector.shape_cast %15 : vector<1x1x256xf32> to vector<1x256xf32>
    %17 = vector.shape_cast %14 : vector<1x256xf32> to vector<1x1x256xf32>
    tpu.vector_store %arg7[%c0_11, %c0_12, %c0_13], %17 {strides = array<i32>} : memref<1x1x256xf32, #tpu.memory_space<vmem>>, vector<1x1x256xf32>,
    %18 = vector.broadcast %4 : vector<1x256xf32> to vector<8x256xf32>
    %19 = arith.subf %6, %18 : vector<8x256xf32>
    %20 = vector.broadcast %3 : f32 to vector<8x256xf32>
    %21 = arith.mulf %19, %20 : vector<8x256xf32>
    %cst_14 = arith.constant dense<0xFF800000> : vector<8xf32>
    %22 = vector.multi_reduction <maximumf>, %21, %cst_14 [1] : vector<8x256xf32> to vector<8xf32>
    %23 = vector.shape_cast %22 : vector<8xf32> to vector<8x1xf32>
    %24 = vector.broadcast %23 : vector<8x1xf32> to vector<8x256xf32>
    %25 = arith.subf %21, %24 : vector<8x256xf32>
    %26 = math.exp %25 : vector<8x256xf32>
    %cst_15 = arith.constant dense<0.000000e+00> : vector<8xf32>
    %27 = vector.multi_reduction <add>, %26, %cst_15 [1] : vector<8x256xf32> to vector<8xf32>
    %28 = vector.shape_cast %27 : vector<8xf32> to vector<8x1xf32>
    %29 = tpu.reciprocal %28 : vector<8x1xf32> -> vector<8x1xf32>
    %30 = vector.broadcast %4 : vector<1x256xf32> to vector<8x256xf32>
    %31 = arith.subf %8, %30 : vector<8x256xf32>
    %32 = vector.broadcast %3 : f32 to vector<8x256xf32>
    %33 = arith.mulf %31, %32 : vector<8x256xf32>
    %cst_16 = arith.constant dense<0xFF800000> : vector<8xf32>
    %34 = vector.multi_reduction <maximumf>, %33, %cst_16 [1] : vector<8x256xf32> to vector<8xf32>
    %35 = vector.shape_cast %34 : vector<8xf32> to vector<8x1xf32>
    %36 = vector.broadcast %35 : vector<8x1xf32> to vector<8x256xf32>
    %37 = arith.subf %33, %36 : vector<8x256xf32>
    %38 = math.exp %37 : vector<8x256xf32>
    %cst_17 = arith.constant dense<0.000000e+00> : vector<8xf32>
    %39 = vector.multi_reduction <add>, %38, %cst_17 [1] : vector<8x256xf32> to vector<8xf32>
    %40 = vector.shape_cast %39 : vector<8xf32> to vector<8x1xf32>
    %41 = tpu.reciprocal %40 : vector<8x1xf32> -> vector<8x1xf32>
    %42 = vector.broadcast %29 : vector<8x1xf32> to vector<8x256xf32>
    %43 = arith.mulf %26, %42 : vector<8x256xf32>
    %44 = vector.broadcast %41 : vector<8x1xf32> to vector<8x256xf32>
    %45 = arith.mulf %38, %44 : vector<8x256xf32>
    %46 = arith.addf %43, %45 : vector<8x256xf32>
    %c0_18 = arith.constant 0 : index
    %c0_19 = arith.constant 0 : index
    %c0_20 = arith.constant 0 : index
    %47 = vector.load %arg3[%c0_18, %c0_19, %c0_20] : memref<4x8x256xf32, #tpu.memory_space<vmem>>, vector<1x8x256xf32>
    %48 = vector.shape_cast %47 : vector<1x8x256xf32> to vector<8x256xf32>
    %cst_21 = arith.constant 1.000000e+01 : f32
    %49 = vector.broadcast %cst_21 : f32 to vector<8x256xf32>
    %50 = arith.mulf %48, %49 : vector<8x256xf32>
    %cst_22 = arith.constant dense<0xFF800000> : vector<8xf32>
    %51 = vector.multi_reduction <maximumf>, %50, %cst_22 [1] : vector<8x256xf32> to vector<8xf32>
    %52 = vector.shape_cast %51 : vector<8xf32> to vector<8x1xf32>
    %53 = vector.broadcast %52 : vector<8x1xf32> to vector<8x256xf32>
    %54 = arith.subf %50, %53 : vector<8x256xf32>
    %55 = math.exp %54 : vector<8x256xf32>
    %cst_23 = arith.constant dense<0.000000e+00> : vector<8xf32>
    %56 = vector.multi_reduction <add>, %55, %cst_23 [1] : vector<8x256xf32> to vector<8xf32>
    %57 = vector.shape_cast %56 : vector<8xf32> to vector<8x1xf32>
    %58 = math.log %57 : vector<8x1xf32>
    %59 = arith.mulf %46, %54 : vector<8x256xf32>
    %cst_24 = arith.constant dense<0.000000e+00> : vector<8xf32>
    %60 = vector.multi_reduction <add>, %59, %cst_24 [1] : vector<8x256xf32> to vector<8xf32>
    %61 = vector.shape_cast %60 : vector<8xf32> to vector<8x1xf32>
    %62 = arith.mulf %26, %54 : vector<8x256xf32>
    %cst_25 = arith.constant dense<0.000000e+00> : vector<8xf32>
    %63 = vector.multi_reduction <add>, %62, %cst_25 [1] : vector<8x256xf32> to vector<8xf32>
    %64 = vector.shape_cast %63 : vector<8xf32> to vector<8x1xf32>
    %65 = arith.mulf %64, %29 : vector<8x1xf32>
    %66 = arith.subf %61, %65 : vector<8x1xf32>
    %67 = arith.subf %66, %58 : vector<8x1xf32>
    %c1_26 = arith.constant 1 : index
    %c0_27 = arith.constant 0 : index
    %c0_28 = arith.constant 0 : index
    %68 = vector.load %arg3[%c1_26, %c0_27, %c0_28] : memref<4x8x256xf32, #tpu.memory_space<vmem>>, vector<1x8x256xf32>
    %69 = vector.shape_cast %68 : vector<1x8x256xf32> to vector<8x256xf32>
    %cst_29 = arith.constant 1.000000e+01 : f32
    %70 = vector.broadcast %cst_29 : f32 to vector<8x256xf32>
    %71 = arith.mulf %69, %70 : vector<8x256xf32>
    %cst_30 = arith.constant dense<0xFF800000> : vector<8xf32>
    %72 = vector.multi_reduction <maximumf>, %71, %cst_30 [1] : vector<8x256xf32> to vector<8xf32>
    %73 = vector.shape_cast %72 : vector<8xf32> to vector<8x1xf32>
    %74 = vector.broadcast %73 : vector<8x1xf32> to vector<8x256xf32>
    %75 = arith.subf %71, %74 : vector<8x256xf32>
    %76 = math.exp %75 : vector<8x256xf32>
    %cst_31 = arith.constant dense<0.000000e+00> : vector<8xf32>
    %77 = vector.multi_reduction <add>, %76, %cst_31 [1] : vector<8x256xf32> to vector<8xf32>
    %78 = vector.shape_cast %77 : vector<8xf32> to vector<8x1xf32>
    %79 = math.log %78 : vector<8x1xf32>
    %80 = arith.mulf %26, %75 : vector<8x256xf32>
    %cst_32 = arith.constant dense<0.000000e+00> : vector<8xf32>
    %81 = vector.multi_reduction <add>, %80, %cst_32 [1] : vector<8x256xf32> to vector<8xf32>
    %82 = vector.shape_cast %81 : vector<8xf32> to vector<8x1xf32>
    %83 = arith.mulf %82, %29 : vector<8x1xf32>
    %84 = arith.subf %83, %79 : vector<8x1xf32>
    %85 = arith.addf %67, %84 : vector<8x1xf32>
    %c2 = arith.constant 2 : index
    %c0_33 = arith.constant 0 : index
    %c0_34 = arith.constant 0 : index
    %86 = vector.load %arg3[%c2, %c0_33, %c0_34] : memref<4x8x256xf32, #tpu.memory_space<vmem>>, vector<1x8x256xf32>
    %87 = vector.shape_cast %86 : vector<1x8x256xf32> to vector<8x256xf32>
    %cst_35 = arith.constant 1.000000e+01 : f32
    %88 = vector.broadcast %cst_35 : f32 to vector<8x256xf32>
    %89 = arith.mulf %87, %88 : vector<8x256xf32>
    %cst_36 = arith.constant dense<0xFF800000> : vector<8xf32>
    %90 = vector.multi_reduction <maximumf>, %89, %cst_36 [1] : vector<8x256xf32> to vector<8xf32>
    %91 = vector.shape_cast %90 : vector<8xf32> to vector<8x1xf32>
    %92 = vector.broadcast %91 : vector<8x1xf32> to vector<8x256xf32>
    %93 = arith.subf %89, %92 : vector<8x256xf32>
    %94 = math.exp %93 : vector<8x256xf32>
    %cst_37 = arith.constant dense<0.000000e+00> : vector<8xf32>
    %95 = vector.multi_reduction <add>, %94, %cst_37 [1] : vector<8x256xf32> to vector<8xf32>
    %96 = vector.shape_cast %95 : vector<8xf32> to vector<8x1xf32>
    %97 = math.log %96 : vector<8x1xf32>
    %98 = arith.mulf %46, %93 : vector<8x256xf32>
    %cst_38 = arith.constant dense<0.000000e+00> : vector<8xf32>
    %99 = vector.multi_reduction <add>, %98, %cst_38 [1] : vector<8x256xf32> to vector<8xf32>
    %100 = vector.shape_cast %99 : vector<8xf32> to vector<8x1xf32>
    %cst_39 = arith.constant 2.000000e+00 : f32
    %101 = vector.broadcast %cst_39 : f32 to vector<8x1xf32>
    %102 = arith.mulf %101, %97 : vector<8x1xf32>
    %103 = arith.subf %100, %102 : vector<8x1xf32>
    %104 = arith.addf %85, %103 : vector<8x1xf32>
    %c3 = arith.constant 3 : index
    %c0_40 = arith.constant 0 : index
    %c0_41 = arith.constant 0 : index
    %105 = vector.load %arg3[%c3, %c0_40, %c0_41] : memref<4x8x256xf32, #tpu.memory_space<vmem>>, vector<1x8x256xf32>
    %106 = vector.shape_cast %105 : vector<1x8x256xf32> to vector<8x256xf32>
    %cst_42 = arith.constant 1.000000e+01 : f32
    %107 = vector.broadcast %cst_42 : f32 to vector<8x256xf32>
    %108 = arith.mulf %106, %107 : vector<8x256xf32>
    %cst_43 = arith.constant dense<0xFF800000> : vector<8xf32>
    %109 = vector.multi_reduction <maximumf>, %108, %cst_43 [1] : vector<8x256xf32> to vector<8xf32>
    %110 = vector.shape_cast %109 : vector<8xf32> to vector<8x1xf32>
    %111 = vector.broadcast %110 : vector<8x1xf32> to vector<8x256xf32>
    %112 = arith.subf %108, %111 : vector<8x256xf32>
    %113 = math.exp %112 : vector<8x256xf32>
    %cst_44 = arith.constant dense<0.000000e+00> : vector<8xf32>
    %114 = vector.multi_reduction <add>, %113, %cst_44 [1] : vector<8x256xf32> to vector<8xf32>
    %115 = vector.shape_cast %114 : vector<8xf32> to vector<8x1xf32>
    %116 = math.log %115 : vector<8x1xf32>
    %117 = arith.mulf %46, %112 : vector<8x256xf32>
    %cst_45 = arith.constant dense<0.000000e+00> : vector<8xf32>
    %118 = vector.multi_reduction <add>, %117, %cst_45 [1] : vector<8x256xf32> to vector<8xf32>
    %119 = vector.shape_cast %118 : vector<8xf32> to vector<8x1xf32>
    %cst_46 = arith.constant 2.000000e+00 : f32
    %120 = vector.broadcast %cst_46 : f32 to vector<8x1xf32>
    %121 = arith.mulf %120, %116 : vector<8x1xf32>
    %122 = arith.subf %119, %121 : vector<8x1xf32>
    %123 = arith.addf %104, %122 : vector<8x1xf32>
    %c0_47 = arith.constant 0 : index
    %c0_48 = arith.constant 0 : index
    %c0_49 = arith.constant 0 : index
    %124 = vector.load %arg6[%c0_47, %c0_48, %c0_49] : memref<1x1x1xf32, #tpu.memory_space<vmem>>, vector<1x1x1xf32>
    %125 = vector.shape_cast %124 : vector<1x1x1xf32> to vector<1x1xf32>
    %cst_50 = arith.constant dense<0.000000e+00> : vector<1xf32>
    %126 = vector.multi_reduction <add>, %123, %cst_50 [0] : vector<8x1xf32> to vector<1xf32>
    %127 = vector.shape_cast %126 : vector<1xf32> to vector<1x1xf32>
    %cst_51 = arith.constant 0.000000e+00 : f32
    %128 = vector.broadcast %cst_51 : f32 to vector<1x1xf32>
    %129 = arith.subf %128, %127 : vector<1x1xf32>
    %130 = arith.addf %125, %129 : vector<1x1xf32>
    %c0_52 = arith.constant 0 : index
    %c0_53 = arith.constant 0 : index
    %c0_54 = arith.constant 0 : index
    %131 = vector.load %arg6[%c0_52, %c0_53, %c0_54] : memref<1x1x1xf32, #tpu.memory_space<vmem>>, vector<1x1x1xf32>
    %132 = vector.shape_cast %131 : vector<1x1x1xf32> to vector<1x1xf32>
    %133 = vector.shape_cast %130 : vector<1x1xf32> to vector<1x1x1xf32>
    tpu.vector_store %arg6[%c0_52, %c0_53, %c0_54], %133 {strides = array<i32>} : memref<1x1x1xf32, #tpu.memory_space<vmem>>, vector<1x1x1xf32>,
    return
  }
  func.func @transform_0(%arg0: i32, %arg1: i32, %arg2: memref<1xf32, #tpu.memory_space<smem>>) -> (i32, i32, i32) {
    %c2_i32 = arith.constant 2 : i32
    %0 = arith.muli %arg0, %c2_i32 : i32
    %1 = arith.addi %0, %arg1 : i32
    %c0_i32 = arith.constant 0 : i32
    %c0_i32_0 = arith.constant 0 : i32
    %c0_i32_1 = arith.constant 0 : i32
    return %c0_i32, %1, %c0_i32_0 : i32, i32, i32
  }
  func.func @transform_1(%arg0: i32, %arg1: i32, %arg2: memref<1xf32, #tpu.memory_space<smem>>) -> (i32, i32, i32) {
    %c2_i32 = arith.constant 2 : i32
    %0 = arith.muli %arg0, %c2_i32 : i32
    %1 = arith.addi %0, %arg1 : i32
    %c0_i32 = arith.constant 0 : i32
    %c0_i32_0 = arith.constant 0 : i32
    %c0_i32_1 = arith.constant 0 : i32
    return %c0_i32, %1, %c0_i32_0 : i32, i32, i32
  }
  func.func @transform_2(%arg0: i32, %arg1: i32, %arg2: memref<1xf32, #tpu.memory_space<smem>>) -> (i32, i32) {
    %c0_i32 = arith.constant 0 : i32
    %c0_i32_0 = arith.constant 0 : i32
    %c0_i32_1 = arith.constant 0 : i32
    return %c0_i32, %c0_i32_0 : i32, i32
  }
  func.func @transform_3(%arg0: i32, %arg1: i32, %arg2: memref<1xf32, #tpu.memory_space<smem>>) -> (i32, i32, i32) {
    %c0_i32 = arith.constant 0 : i32
    %c0_i32_0 = arith.constant 0 : i32
    %c0_i32_1 = arith.constant 0 : i32
    return %arg0, %c0_i32, %c0_i32_0 : i32, i32, i32
  }
  func.func @transform_4(%arg0: i32, %arg1: i32, %arg2: memref<1xf32, #tpu.memory_space<smem>>) -> (i32, i32, i32) {
    %c0_i32 = arith.constant 0 : i32
    %c0_i32_0 = arith.constant 0 : i32
    %c0_i32_1 = arith.constant 0 : i32
    return %arg0, %c0_i32, %c0_i32_0 : i32, i32, i32
  }
}

</mosaic_0001>

<bundles_post_ra>
// kernel: _dino_forward.1
= control target key start
LH: loop header
LB: loop body
LE: loop exit
PB: predicated region body
PF: predicated region fallthrough
CT: control target
= control target key end

     0   :  { %s1234_s0 = inlined_call_operand.<no memory space> [shape: f32[1], index: 0, kind: input, shape index: {}]   ;;  %s1235_s1 = inlined_call_operand.hbm [shape: f32[4,32,256], index: 1, kind: input, shape index: {}]   ;;  %s1236_s2 = inlined_call_operand.hbm [shape: f32[2,32,256], index: 2, kind: input, shape index: {}]   ;;  %s1237_s3 = inlined_call_operand.vmem [shape: f32[1,256], index: 3, kind: input, shape index: {}]   ;;  %s1238_s4 = inlined_call_operand.vmem [shape: f32[2,1,1], index: 4, kind: output, shape index: {0}]   ;;  %s1239_s5 = inlined_call_operand.vmem [shape: f32[2,1,256], index: 5, kind: output, shape index: {1}]  }
   0x1   :  { %1242 = sst [smem:[#allocation11_spill]] %s1235_s1 }
   0x2   :  { %11 = sst [smem:[#allocation3]] %s1234_s0 }
   0x3   :  { %12 = vsyncpa [#allocation5], 0 }
   0x4   :  { %14 = vsyncpa [#allocation5 + $0x1], 0 }
   0x5   :  { %15 = vsyncpa [#allocation7], 0 }
   0x6   :  { %17 = vsyncpa [#allocation7 + $0x1], 0  ;;  %s977_s20 = smov 0   ;;  %s979_s21 = smov 0  }
   0x7   :  { %s981_s22 = smov 0   ;;  %s983_s23 = smov 0  }
   0x8   :  { %s985_s24 = smov 0   ;;  %s987_s25 = smov 0  }
   0x9   :  { %s989_s26 = smov 0   ;;  %s991_s27 = smov 0  }
   0xa LB: > { %s655_s0 = sadd.s32 4294967295, %s935_s27   ;;  %s32_s28 = sadd.s32 1, %s927_s25  ;;  %s935_s27 = sphi %s991_s27, %s23_s27   ;;  %s931_s26 = sphi %s989_s26, %s1258_s26   ;;  %s927_s25 = sphi %s987_s25, %s1257_s25   ;;  %s923_s24 = sphi %s985_s24, %s1256_s24   ;;  %s919_s23 = sphi %s983_s23, %s1255_s23   ;;  %s915_s22 = sphi %s981_s22, %s1254_s22   ;;  %s911_s21 = sphi %s979_s21, %s1253_s21   ;;  %s907_s20 = sphi %s977_s20, %s1252_s20  }
   0xb   : > { %p33_p0 = scmp.ge.s32.totalorder %s32_s28, 2  ;;  %s35_s29 = sadd.s32 1, %s931_s26 }
   0xc   : > { %s657_s30 = sshll.u32 %s931_s26, 1  ;;  %s46_s6 = sadd.s32 1, %s915_s22 }
   0xd   : > { %s1260_s28 = smov (%p33_p0, %s32_s28), 0  ;;  %s1262_s29 = smov (!%p33_p0, %s35_s29), %s931_s26 }
   0xe   : > { %s1024_s7 = sadd.s32 %s927_s25, %s657_s30  ;;  %p53_p1 = scmp.ne.s32.totalorder %s915_s22, %s911_s21 }
   0xf   : > { %p37_p2 = scmp.ge.s32.totalorder %s1262_s29, 2  ;;  %p54_p3 = scmp.eq.s32.totalorder %s935_s27, 0 }
  0x10   : > { %p59_p4 = scmp.ne.s32.totalorder %s911_s21, %s907_s20  ;;  %p60_p5 = scmp.eq.s32.totalorder %s655_s0, 0 }
  0x11   : > { %s1264_s29 = smov (%p37_p2, %s1262_s29), 0  ;;  %p1032_p6 = por %p54_p3, %p53_p1 }
  0x12   : > { %1243 = sst [smem:[#allocation10_spill]] %s1264_s29  ;;  %p1036_p7 = por %p60_p5, %p59_p4 }
  0x13   : > { %s658_s10 = sshll.u32 %s1264_s29, 1  ;;  %p699_p8 = scmp.lt.s32.totalorder %s935_s27, 4 }
  0x14   : > { %s1245_s9 = scalar_select %p1036_p7, 1, 0 }
  0x15   : > { %s42_s11 = sadd.s32 %s658_s10, %s1260_s28  ;;  %s1045_s13 = sand.u32 1, %s915_s22  }
  0x16   : > { %s43_s12 = ssub.s32 %s1024_s7, %s42_s11  ;;  %s663_s14 = sshll.u32 %s1045_s13, 6 }
  0x17   : > { %p44_p9 = scmp.eq.s32.totalorder %s43_s12, 0  ;;  %s686_s15 = sshll.u32 %s1024_s7, 8 }
  0x18   : > { %s1246_s1 = sld [smem:[#allocation11_spill]]  ;;  %s193_s20 = scalar_lea.vmem [#allocation4], %s663_s14 }
  0x19   : > { %s1050_s16 = scalar_select %p44_p9, %s915_s22, %s46_s6  }
  0x1a   : > { %s202_s0 = sshll.u32 %s193_s20, 4  ;;  %p1061_p10 = pnand %p699_p8, %p1032_p6  ;;  %s1065_s0 = int_to_ptr.vmem [resolvable:$true] %s202_s0 }
  0x1b   : > { %s190_s6 = scalar_lea.sflag [#allocation5], %s1045_s13 }
  0x1c   : > { %p807_p13 = pneg %p1061_p10 }
  0x1e   : > { %s1057_s19 = scalar_lea.hbm %s1246_s1, %s686_s15  ;;  %s810_s12 = scalar_lea.hbm %s1246_s1, 4096 }
  0x1f   : > { %s805_s10 = scalar_lea.hbm %s1057_s19, 1024  ;;  %p811_p2 = scmp.lt.u32.totalorder %s1057_s19, %s1246_s1 }
  0x20   : > { %p806_p12 = scmp.ne.s32.totalorder %s1057_s19, %s805_s10  ;;  %p812_p3 = scmp.lt.u32.totalorder %s810_s12, %s805_s10 }
  0x21   : > { %p814_p5 = scmp.lt.u32.totalorder %s805_s10, %s1057_s19 }
  0x22   : > { %p808_p0 = pnand %p807_p13, %p806_p12  ;;  %p813_p4 = por %p812_p3, %p811_p2 }
  0x24   : > { %p809_p1 = pneg %p808_p0  ;;  %p815_p6 = por %p814_p5, %p813_p4 }
  0x26   : > { %p816_p8 = pnand %p815_p6, %p809_p1 }
  0x28   : > { %819 = shalt.err (!%p816_p8)
}
  0x29   : > { %s820_s18 = scalar_lea.vmem %s1065_s0, 1024  ;;  %s937_s20 = smov [#allocation4]  }
  0x2a   : > { %p821_p9 = scmp.ne.s32.totalorder %s1065_s0, %s820_s18  ;;  %s825_s11 = sshll.u32 %s937_s20, 4  ;;  %s826_s11 = int_to_ptr.vmem [resolvable:$false] %s825_s11 }
  0x2b   : > { %s827_s8 = scalar_lea.vmem %s826_s11, 2048  ;;  %p828_p11 = scmp.lt.s32.totalorder %s1065_s0, %s826_s11 }
  0x2c   : > { %p823_p12 = pnand %p821_p9, %p807_p13  ;;  %p829_p2 = scmp.lt.s32.totalorder %s827_s8, %s820_s18 }
  0x2e   : > { %p824_p0 = pneg %p823_p12  ;;  %p830_p3 = por %p829_p2, %p828_p11 }
  0x30   : > { %p831_p4 = pnand %p830_p3, %p824_p0 }
  0x32   : > { %834 = shalt.err (!%p831_p4)
}
  0x33   : > { %s938_s10 = smov 1024   ;;  %s939_s12 = smov 256  }
  0x34   : > { %s940_s14 = smov 16   ;;  %p233_p11 = scmp.lt.s32.totalorder %s935_s27, 5 }
  0x35   : > { %695 = dma.hbm_to_vmem [thread:$0]  (!%p1061_p10), %s1057_s19, 1024, %s1065_s0, %s190_s6, %s938_s10, %s939_s12, %s940_s14  }
  0x36   : > { %s667_s17 = sshll.u32 %s1045_s13, 5  ;;  %s1106_s11 = scalar_lea.hbm %s1236_s2, %s686_s15 }
  0x37   : > { %p1248_p1 = scmp.ge.s32.totalorder %s935_s27, 1  ;;  %s216_s1 = scalar_lea.vmem [#allocation6], %s667_s17 }
  0x38   : > { %s225_s29 = sshll.u32 %s216_s1, 4  ;;  %s213_s19 = scalar_lea.sflag [#allocation7], %s1045_s13  ;;  %s1114_s29 = int_to_ptr.vmem [resolvable:$true] %s225_s29 }
  0x39   : > { %p1110_p5 = pnand %p1248_p1, %p233_p11  ;;  %s835_s7 = scalar_lea.hbm %s1106_s11, 512 }
  0x3a   : > { %p836_p6 = scmp.ne.s32.totalorder %s1106_s11, %s835_s7  ;;  %s840_s6 = scalar_lea.hbm %s1236_s2, 2048 }
  0x3b   : > { %p841_p12 = scmp.lt.u32.totalorder %s1106_s11, %s1236_s2  ;;  %p842_p0 = scmp.lt.u32.totalorder %s840_s6, %s835_s7 }
  0x3c   : > { %p838_p8 = pnand %p836_p6, %p807_p13  ;;  %p844_p3 = scmp.lt.u32.totalorder %s835_s7, %s1106_s11 }
  0x3d   : > { %p843_p2 = por %p842_p0, %p841_p12 }
  0x3e   : > { %p839_p9 = pneg %p838_p8 }
  0x3f   : > { %p845_p4 = por %p844_p3, %p843_p2 }
  0x41   : > { %p846_p11 = pnand %p845_p4, %p839_p9 }
  0x43   : > { %849 = shalt.err (!%p846_p11)
}
  0x44   : > { %s850_s1 = scalar_lea.vmem %s1114_s29, 512  ;;  %s941_s17 = smov [#allocation6]  }
  0x45   : > { %p851_p1 = scmp.ne.s32.totalorder %s1114_s29, %s850_s1  ;;  %s855_s15 = sshll.u32 %s941_s17, 4  ;;  %s856_s15 = int_to_ptr.vmem [resolvable:$false] %s855_s15 }
  0x46   : > { %s857_s0 = scalar_lea.vmem %s856_s15, 1024  ;;  %p858_p7 = scmp.lt.s32.totalorder %s1114_s29, %s856_s15 }
  0x47   : > { %p853_p6 = pnand %p851_p1, %p807_p13  ;;  %p859_p12 = scmp.lt.s32.totalorder %s857_s0, %s850_s1 }
  0x49   : > { %p854_p8 = pneg %p853_p6  ;;  %p860_p0 = por %p859_p12, %p858_p7 }
  0x4b   : > { %p861_p2 = pnand %p860_p0, %p854_p8 }
  0x4d   : > { %864 = shalt.err (!%p861_p2)
}
  0x4e   : > { %698 = dma.hbm_to_vmem [thread:$0]  (!%p1061_p10), %s1106_s11, 512, %s1114_s29, %s213_s19, %s938_s10, %s939_s12, %s940_s14  }
  0x4f   : > { %237 = sbr.rel (%p1110_p5) target bundleno = 607 (0x25f), region = 32  ;;  %s239_s7 = sand.u32 (!%p1110_p5), 1, %s911_s21  }
  0x50   : > { %s672_s6 = sshll.u32 (!%p1110_p5), %s239_s7, 6  ;;  %s240_s18 = scalar_lea.sflag (!%p1110_p5), [#allocation5], %s239_s7 }
  0x51   : > { %s1148_s20 = scalar_lea.vmem (!%p1110_p5), [#allocation4], %s672_s6  ;;  %p1250_p7 = scmp.ne.s32.totalorder (!%p1110_p5), %s1245_s9, 0 }
  0x56   : > { %898 = dma.done.wait (%p1250_p7), %s240_s18, 1024  }
  0x57   : > { %900 = vsyncadd (%p1250_p7), %s240_s18, 4294966272  ;;  %s673_s13 = sshll.u32 %s239_s7, 5  ;;  %s249_s30 = scalar_lea.sflag [#allocation7], %s239_s7 }
  0x58   : > { %s252_s1 = scalar_lea.vmem [#allocation6], %s673_s13 }
  0x59   : > { %902 = dma.done.wait (%p1250_p7), %s249_s30, 512  }
  0x5a   : > { %904 = vsyncadd (%p1250_p7), %s249_s30, 4294966784  ;;  %p288_p10 = scmp.lt.s32.totalorder %s923_s24, 1  ;;  %p675_p13 = scmp.ne.s32.totalorder %s919_s23, 0 }
  0x5b   : > { %vm299_vm0 = vcmask (!%p675_p13), 0   ;;  %v301_v0 = vlaneseq (!%p675_p13)  ;;  %v942_v1 = vmov (!%p675_p13), 0.0  }
  0x5c   : > { %s1266_s24 = smov (!%p288_p10, %s923_s24), 1  ;;  %298 = sbr.rel (%p675_p13) target bundleno = 99 (0x63), region = 44 }
  0x5d   : > { %s1163_s12 = scalar_lea.vmem %s1238_s4, %s1266_s24  ;;  %s674_s14 = sshll.u32 %s1266_s24, 1  ;;  %vm303_vm1 = vcmp.lt.s32.totalorder (!%p675_p13), %v301_v0, 256 }
  0x5e   : > { %s1168_s19 = scalar_lea.vmem %s1239_s5, %s674_s14  ;;  %300 = vst.msk [vmem:[%s1163_s12] sm:$0x1] (!%p675_p13), %vm299_vm0, %v942_v1 }
  0x5f   : > { %305 = vst.msk [vmem:[%s1168_s19] sm:$0x3] (!%p675_p13), %vm303_vm1, %v942_v1 }
  0x63 PF: > { %s306_s9 = sld [smem:[#allocation3]]  ;;  %v308_v2 = vld [vmem:[%s252_s1] sm:$0xff]  ;;  %v334_v3 = vlaneseq  ;;  %v309_v5 = vld [vmem:[%s252_s1 + $0x8] sm:$0xff]  ;;  %v676_v6 = vld [vmem:[%s252_s1 + $0x10] sm:$0xff]  ;;  %v943_v26 = vmov 1966171168  }
  0x64   : > { %v307_v4 = vld [vmem:[%s1237_s3] sm:$0x3]  ;;  %v677_v7 = vld [vmem:[%s252_s1 + $0x18] sm:$0xff]  ;;  %v314_v8 = vadd.f32 %v676_v6, %v308_v2  ;;  %v405_v12 = vld [vmem:[%s1148_s20 + $0x8] sm:$0xff]  ;;  %v332_v27 = vunpack.c.l.s4 %v943_v26  ;;  %vm525_vm3 = vcmask 0  }
  0x65   : > { %v315_v9 = vadd.f32 %v677_v7, %v309_v5  ;;  %v335_v10 = vshrl.u32 %v334_v3, 7  ;;  %v404_v11 = vld [vmem:[%s1148_s20] sm:$0xff]  ;;  %v678_v13 = vld [vmem:[%s1148_s20 + $0x10] sm:$0xff]  ;;  %v407_v15 = vmul.f32 10.0, %v405_v12  ;;  %v679_v16 = vld [vmem:[%s1148_s20 + $0x18] sm:$0xff]  ;;  %vm349_vm2 = vcmp.lt.s32.totalorder %v334_v3, 256 }
  0x66   : > { %v406_v14 = vmul.f32 10.0, %v404_v11  ;;  %v1180_v17 = vmul.f32 10.0, %v678_v13  ;;  %v316_v18 = vrot.slane %v314_v8, 4  ;;  %v439_v23 = vmul.f32 10.0, %v679_v16  ;;  %v680_v47 = vld [vmem:[%s1148_s20 + $0x20] sm:$0xff]  ;;  %v681_v48 = vld [vmem:[%s1148_s20 + $0x28] sm:$0xff] }
  0x67   : > { %v322_v19 = vrot.slane %v315_v9, 4  ;;  %v355_v20 = vsub.s32 0, %v335_v10  ;;  %v359_v21 = vsub.s32 1, %v335_v10  ;;  %v333_v40 = vunpack.c.0.s8 %v332_v27  ;;  %v313_v58 = vld [vmem:[%s1168_s19] sm:$0x3]  ;;  %v682_v62 = vld [vmem:[%s1148_s20 + $0x30] sm:$0xff] }
  0x68   : > { %v408_v22 = vmax.f32 %v406_v14, %v407_v15  ;;  %v317_v24 = vadd.f32 %v316_v18, %v314_v8  ;;  %v440_v31 = vmax.f32 %v1180_v17, %v439_v23  ;;  %v465_v54 = vmul.f32 10.0, %v680_v47  ;;  %v683_v63 = vld [vmem:[%s1148_s20 + $0x38] sm:$0xff] }
  0x69   : > { %v323_v25 = vadd.f32 %v322_v19, %v315_v9  ;;  %v356_v28 = vrot.slane %v307_v4, %v355_v20  ;;  %v360_v29 = vrot.slane %v307_v4, %v359_v21  ;;  %v365_v30 = vstv %s306_s9 }
  0x6a   : > { %409 = vmax.xlane.f32.xlu1 %v408_v22  ;;  %v318_v32 = vrot.slane %v317_v24, 2  ;;  %v336_v52 = vsub.s32 %v333_v40, %v335_v10  ;;  %v466_v55 = vmul.f32 10.0, %v681_v48  ;;  %v492_v0 = vmul.f32 10.0, %v682_v62 }
  0x6b   : > { %v324_v33 = vrot.slane %v323_v25, 2  ;;  %v363_v34 = vsub.f32 %v308_v2, %v356_v28  ;;  %v381_v35 = vsub.f32 %v676_v6, %v356_v28  ;;  %v364_v36 = vsub.f32 %v309_v5, %v360_v29 }
  0x6c   : > { %v382_v37 = vsub.f32 %v677_v7, %v360_v29  ;;  %v319_v38 = vadd.f32 %v318_v32, %v317_v24  ;;  %v467_v59 = vmax.f32 %v465_v54, %v466_v55  ;;  %v493_v1 = vmul.f32 10.0, %v683_v63 }
  0x6d   : > { %v325_v39 = vadd.f32 %v324_v33, %v323_v25  ;;  %v366_v41 = vmul.f32 %v365_v30, %v363_v34  ;;  %v367_v42 = vmul.f32 %v365_v30, %v364_v36  ;;  %v383_v43 = vmul.f32 %v381_v35, %v365_v30 }
  0x6e   : > { %v384_v44 = vmul.f32 %v382_v37, %v365_v30  ;;  %441 = vmax.xlane.f32.xlu1 %v440_v31  ;;  %v320_v45 = vrot.slane %v319_v38, 1  ;;  %v494_v2 = vmax.f32 %v492_v0, %v493_v1 }
  0x6f   : > { %v326_v46 = vrot.slane %v325_v39, 1  ;;  %v368_v49 = vmax.f32 %v366_v41, %v367_v42 }
  0x70   : > { %v321_v50 = vadd.f32 %v320_v45, %v319_v38  ;;  %v385_v53 = vmax.f32 %v383_v43, %v384_v44 }
  0x71   : > { %v327_v51 = vadd.f32 %v326_v46, %v325_v39  ;;  %369 = vmax.xlane.f32.xlu0 %v368_v49 }
  0x72   : > { %495 = vmax.xlane.f32.xlu1 %v494_v2 }
  0x73   : > { %v330_v56 = vcombine.low %v321_v50, %v327_v51 }
  0x75   : > { %v337_v57 = vrot.slane %v330_v56, %v336_v52  ;;  %386 = vmax.xlane.f32.xlu0 %v385_v53 }
  0x77   : > { %v344_v60 = vrot.slane %v337_v57, %v336_v52 }
  0x79   : > { %v346_v61 = vadd.f32 %v344_v60, %v313_v58  ;;  %468 = vmax.xlane.f32.xlu0 %v467_v59 }
  0x7b   : > { %351 = vst.msk [vmem:[%s1168_s19] sm:$0x3] %vm349_vm2, %v346_v61 }
  0xf7   : > { %v410_v4 = vpop.xlane.xlu1 %409 }
  0xf8   : > { %v1189_v5 = vsub.f32 %v406_v14, %v410_v4  ;;  %v1191_v6 = vsub.f32 %v407_v15, %v410_v4 }
  0xfa   : > { %v413_v8 = vmul.f32 1.442695, %v1189_v5  ;;  %v415_v10 = vmul.f32 1.442695, %v1191_v6 }
  0xfb   : > { %v442_v7 = vpop.xlane.xlu1 %441 }
  0xfc   : > { %v443_v9 = vsub.f32 %v1180_v17, %v442_v7  ;;  %v444_v11 = vsub.f32 %v439_v23, %v442_v7  ;;  %769 = vpow2.f32 %v413_v8 }
  0xfd   : > { %771 = vpow2.f32 %v415_v10 }
  0xfe   : > { %v370_v3 = vpop.xlane.xlu0 %369  ;;  %v445_v19 = vmul.f32 1.442695, %v443_v9  ;;  %v447_v20 = vmul.f32 1.442695, %v444_v11 }
  0xff   : > { %v371_v12 = vsub.f32 %v366_v41, %v370_v3  ;;  %v372_v13 = vsub.f32 %v367_v42, %v370_v3  ;;  %v496_v41 = vpop.xlane.xlu1 %495 }
 0x101   : > { %v373_v16 = vmul.f32 1.442695, %v371_v12  ;;  %v375_v18 = vmul.f32 1.442695, %v372_v13 }
 0x102   : > { %v387_v14 = vpop.xlane.xlu0 %386 }
 0x103   : > { %773 = vpow2.f32 %v373_v16  ;;  %v388_v15 = vsub.f32 %v383_v43, %v387_v14  ;;  %v389_v21 = vsub.f32 %v384_v44, %v387_v14  ;;  %v497_v43 = vsub.f32 %v492_v0, %v496_v41 }
 0x104   : > { %775 = vpow2.f32 %v375_v18  ;;  %v498_v44 = vsub.f32 %v493_v1, %v496_v41 }
 0x105   : > { %v390_v22 = vmul.f32 1.442695, %v388_v15  ;;  %v392_v24 = vmul.f32 1.442695, %v389_v21  ;;  %777 = vpow2.f32 %v445_v19  ;;  %v499_v48 = vmul.f32 1.442695, %v497_v43 }
 0x106   : > { %779 = vpow2.f32 %v447_v20  ;;  %v469_v17 = vpop.xlane.xlu0 %468  ;;  %v770_v28 = vpop.eup %769  ;;  %v501_v49 = vmul.f32 1.442695, %v498_v44 }
 0x107   : > { %781 = vpow2.f32 %v390_v22  ;;  %v1196_v23 = vsub.f32 %v465_v54, %v469_v17  ;;  %v1198_v25 = vsub.f32 %v466_v55, %v469_v17  ;;  %v772_v29 = vpop.eup %771 }
 0x108   : > { %783 = vpow2.f32 %v392_v24  ;;  %v417_v36 = vadd.f32 %v772_v29, %v770_v28 }
 0x109   : > { %v472_v26 = vmul.f32 1.442695, %v1196_v23  ;;  %v474_v27 = vmul.f32 1.442695, %v1198_v25 }
 0x10b   : > { %785 = vpow2.f32 %v472_v26 }
 0x10c   : > { %787 = vpow2.f32 %v474_v27 }
 0x10d   : > { %v774_v30 = vpop.eup %773  ;;  %789 = vpow2.f32 %v499_v48 }
 0x10e   : > { %v776_v31 = vpop.eup %775  ;;  %v427_v46 = vmul.f32 %v774_v30, %v1189_v5  ;;  %v454_v51 = vmul.f32 %v774_v30, %v443_v9  ;;  %791 = vpow2.f32 %v501_v49 }
 0x10f   : > { %v778_v32 = vpop.eup %777  ;;  %v377_v33 = vadd.f32 %v776_v31, %v774_v30  ;;  %v428_v47 = vmul.f32 %v776_v31, %v1191_v6  ;;  %v455_v52 = vmul.f32 %v776_v31, %v444_v11 }
 0x110   : > { %v780_v34 = vpop.eup %779 }
 0x111   : > { %v782_v35 = vpop.eup %781  ;;  %378 = vadd.xlane.f32.xlu0 %v377_v33  ;;  %v449_v40 = vadd.f32 %v780_v34, %v778_v32  ;;  %v429_v50 = vadd.f32 %v428_v47, %v427_v46  ;;  %v456_v53 = vadd.f32 %v455_v52, %v454_v51  ;;  %v516_v47 = vld [vmem:[%s1163_s12] sm:$0x1] }
 0x112   : > { %v784_v37 = vpop.eup %783 }
 0x113   : > { %v394_v38 = vadd.f32 %v784_v37, %v782_v35 }
 0x115   : > { %v786_v39 = vpop.eup %785  ;;  %418 = vadd.xlane.f32.xlu0 %v417_v36  ;;  %395 = vadd.xlane.f32.xlu1 %v394_v38 }
 0x116   : > { %v788_v42 = vpop.eup %787 }
 0x117   : > { %v476_v45 = vadd.f32 %v788_v42, %v786_v39  ;;  %v790_v54 = vpop.eup %789 }
 0x118   : > { %v792_v55 = vpop.eup %791 }
 0x119   : > { %450 = vadd.xlane.f32.xlu1 %v449_v40  ;;  %477 = vadd.xlane.f32.xlu0 %v476_v45  ;;  %v503_v56 = vadd.f32 %v792_v55, %v790_v54 }
 0x11d   : > { %430 = vadd.xlane.f32.xlu0 %v429_v50  ;;  %504 = vadd.xlane.f32.xlu1 %v503_v56 }
 0x121   : > { %457 = vadd.xlane.f32.xlu0 %v456_v53 }
 0x19e   : > { %v379_v57 = vpop.xlane.xlu0 %378 }
 0x19f   : > { %793 = vrcp.f32 %v379_v57 }
 0x1a2   : > { %v396_v58 = vpop.xlane.xlu1 %395  ;;  %v419_v16 = vpop.xlane.xlu0 %418 }
 0x1a3   : > { %795 = vrcp.f32 %v396_v58 }
 0x1a6   : > { %v451_v18 = vpop.xlane.xlu1 %450  ;;  %v478_v19 = vpop.xlane.xlu0 %477 }
 0x1a7   : > { %797 = vlog2.f32 %v478_v19 }
 0x1a8   : > { %799 = vlog2.f32 %v451_v18 }
 0x1a9   : > { %v794_v59 = vpop.eup %793 }
 0x1aa   : > { %v398_v61 = vmul.f32 %v794_v59, %v774_v30  ;;  %v399_v62 = vmul.f32 %v794_v59, %v776_v31  ;;  %v505_v14 = vpop.xlane.xlu1 %504 }
 0x1ab   : > { %801 = vlog2.f32 %v505_v14 }
 0x1ac   : > { %803 = vlog2.f32 %v419_v16 }
 0x1ad   : > { %v796_v60 = vpop.eup %795 }
 0x1ae   : > { %v400_v63 = vmul.f32 %v796_v60, %v782_v35  ;;  %v401_v0 = vmul.f32 %v796_v60, %v784_v37 }
 0x1b0   : > { %v402_v1 = vadd.f32 %v400_v63, %v398_v61  ;;  %v403_v2 = vadd.f32 %v401_v0, %v399_v62 }
 0x1b2   : > { %v508_v4 = vmul.f32 %v497_v43, %v402_v1  ;;  %v509_v7 = vmul.f32 %v498_v44, %v403_v2  ;;  %v422_v8 = vmul.f32 %v1189_v5, %v402_v1  ;;  %v423_v9 = vmul.f32 %v1191_v6, %v403_v2  ;;  %v431_v5 = vpop.xlane.xlu0 %430  ;;  %v798_v6 = vpop.eup %797 }
 0x1b3   : > { %v481_v11 = vmul.f32 %v1196_v23, %v402_v1  ;;  %v482_v12 = vmul.f32 %v1198_v25, %v403_v2  ;;  %v800_v20 = vpop.eup %799  ;;  %v480_v21 = vmul.f32 0.6931472, %v798_v6  ;;  %v432_v23 = vmul.f32 %v794_v59, %v431_v5 }
 0x1b4   : > { %v510_v3 = vadd.f32 %v509_v7, %v508_v4  ;;  %v424_v10 = vadd.f32 %v423_v9, %v422_v8  ;;  %v453_v17 = vmul.f32 0.6931472, %v800_v20 }
 0x1b5   : > { %v483_v13 = vadd.f32 %v482_v12, %v481_v11  ;;  %v802_v15 = vpop.eup %801  ;;  %v486_v30 = vmul.f32 2.0, %v480_v21 }
 0x1b6   : > { %511 = vadd.xlane.f32.xlu0 %v510_v3  ;;  %425 = vadd.xlane.f32.xlu1 %v424_v10  ;;  %v804_v22 = vpop.eup %803  ;;  %v458_v24 = vpop.xlane.xlu0 %457  ;;  %v507_v25 = vmul.f32 0.6931472, %v802_v15 }
 0x1b7   : > { %v421_v27 = vmul.f32 0.6931472, %v804_v22  ;;  %v459_v28 = vmul.f32 %v794_v59, %v458_v24 }
 0x1b8   : > { %v513_v33 = vmul.f32 2.0, %v507_v25 }
 0x1b9   : > { %v460_v31 = vsub.f32 %v459_v28, %v453_v17 }
 0x1ba   : > { %484 = vadd.xlane.f32.xlu1 %v483_v13 }
 0x243   : > { %v426_v26 = vpop.xlane.xlu1 %425  ;;  %v512_v34 = vpop.xlane.xlu0 %511 }
 0x244   : > { %v433_v29 = vsub.f32 %v426_v26, %v432_v23  ;;  %v514_v38 = vsub.f32 %v512_v34, %v513_v33 }
 0x246   : > { %v434_v32 = vsub.f32 %v433_v29, %v421_v27 }
 0x247   : > { %v485_v35 = vpop.xlane.xlu1 %484 }
 0x248   : > { %v461_v36 = vadd.f32 %v460_v31, %v434_v32  ;;  %v487_v37 = vsub.f32 %v485_v35, %v486_v30 }
 0x24a   : > { %v488_v39 = vadd.f32 %v487_v37, %v461_v36 }
 0x24c   : > { %v515_v40 = vadd.f32 %v514_v38, %v488_v39 }
 0x24e   : > { %v517_v41 = vrot.slane %v515_v40, 4 }
 0x250   : > { %v518_v42 = vadd.f32 %v517_v41, %v515_v40 }
 0x252   : > { %v519_v43 = vrot.slane %v518_v42, 2 }
 0x254   : > { %v520_v44 = vadd.f32 %v519_v43, %v518_v42 }
 0x256   : > { %v521_v45 = vrot.slane %v520_v44, 1 }
 0x258   : > { %v522_v46 = vadd.f32 %v521_v45, %v520_v44 }
 0x25a   : > { %v523_v48 = vsub.f32 0.0, %v522_v46 }
 0x25c   : > { %v524_v49 = vadd.f32 %v523_v48, %v516_v47 }
 0x25e   : > { %526 = vst.msk [vmem:[%s1163_s12] sm:$0x1] %vm525_vm3, %v524_v49 }
 0x25f PF: > { %s23_s27 = sadd.s32 1, %s935_s27   ;;  %s1251_s15 = sld [smem:[#allocation10_spill]] }
 0x260   : > { %p20_p5 = scmp.ge.s32.totalorder %s23_s27, 6   ;;  %s1252_s20 = smov %s911_s21 }
 0x261   : > { %s1253_s21 = smov %s915_s22  ;;  %s1254_s22 = smov %s1050_s16 }
 0x262   : > { %s1255_s23 = smov %s927_s25  ;;  %s1256_s24 = smov %s931_s26 }
 0x263   : > { %s1257_s25 = smov %s1260_s28  ;;  %22 = sbr.rel (!%p20_p5) target bundleno = 10 (0xa), region = 105 }
 0x265   : > { %s1258_s26 = smov %s1251_s15 }
 0x26a   :  { %558 = vsyncpa [#allocation5], 1 }
 0x26b   :  { %560 = vsyncpa [#allocation5 + $0x1], 1 }
 0x26c   :  { %561 = vsyncpa [#allocation7], 1 }
 0x26d   :  { %563 = vsyncpa [#allocation7 + $0x1], 1 }

</bundles_post_ra>
